<compile_context>
chip_gen: v7x
topology: tpu7x:2x2x1
jax: 0.10.0
libtpu: 0.0.40
codegen_flags: <defaults>
</compile_context>

<pallas_src>
import functools

import jax
import jax.numpy as jnp
from jax.experimental import pallas as pl
from jax.experimental.pallas import tpu as pltpu


def _round_up(x, m):
    return (x + m - 1) // m * m


def _multilabel_emb_kernel(training, p, tv, L,
                           seed_ref, idx_ref, emb_ref, out_ref, acc_ref):
    k = pl.program_id(1)

    @pl.when(k == 0)
    def _():
        acc_ref[...] = jnp.zeros_like(acc_ref)

    # Build the (tm, tv) multi-hot count tile for this V-slab from the label ids.
    idx = idx_ref[...]                                     # (tm, L) int32
    tm = idx_ref.shape[0]
    vocab = k * tv + jax.lax.broadcasted_iota(jnp.int32, (tm, tv), 1)
    mh = jnp.zeros((tm, tv), dtype=jnp.float32)
    for l in range(L):                                     # L is tiny -> static unroll
        lab = idx[:, l:l + 1]                              # (tm, 1)
        hit = (vocab == lab) & (lab != 0)                  # padding_idx=0 contributes 0
        mh = mh + hit.astype(jnp.float32)
    mh = mh.astype(emb_ref.dtype)                          # bf16 MXU operand (counts exact)

    acc_ref[...] += jnp.dot(mh, emb_ref[...], preferred_element_type=jnp.float32)

    @pl.when(k == pl.num_programs(1) - 1)
    def _():
        acc = acc_ref[...]
        if training and p > 0.0:
            # TODO(synk): training-mode dropout draws from the TPU on-chip PRNG,
            # so its random stream necessarily differs from torch's F.dropout.
            pltpu.prng_seed(seed_ref[0] + pl.program_id(0))      # distinct per M tile
            bits = pltpu.bitcast(pltpu.prng_random_bits(acc.shape), jnp.uint32)
            thresh = jnp.uint32(min(int(p * 2.0 ** 32), 2 ** 32 - 1))
            acc = jnp.where(bits >= thresh, acc * (1.0 / (1.0 - p)), 0.0)
        out_ref[...] = acc.astype(out_ref.dtype)


def multilabel_embedding(indices, emb_matrix, *, dropout=0.5, training=False, seed=0,
                         compute_dtype=jnp.bfloat16, tm_target=256, tv_target=512):
    """indices: (B, S, L) int32 padded with 0 (padding_idx); emb_matrix: (V, D) f32."""
    B, S, L = indices.shape
    V, D = emb_matrix.shape
    M = B * S
    p = 0.0 if dropout is None else float(dropout)

    # Tile sizes: MXU-friendly targets, clamped/padded for small shapes.
    tm = min(tm_target, _round_up(M, 8))
    M_pad = _round_up(M, tm)
    tv = min(tv_target, _round_up(V, 8))
    V_pad = _round_up(V, tv)
    D_pad = _round_up(D, 128)                              # lane-dense output

    idx = indices.reshape(M, L).astype(jnp.int32)
    idx = jnp.pad(idx, ((0, M_pad - M), (0, 0)))           # pad rows with padding_idx=0
    emb = emb_matrix.astype(compute_dtype)
    emb = jnp.pad(emb, ((0, V_pad - V), (0, D_pad - D)))

    seed_arr = jnp.array([seed], dtype=jnp.int32)
    kernel = functools.partial(_multilabel_emb_kernel, bool(training), p, tv, L)

    out = pl.pallas_call(
        kernel,
        out_shape=jax.ShapeDtypeStruct((M_pad, D_pad), jnp.float32),
        grid_spec=pltpu.PrefetchScalarGridSpec(
            num_scalar_prefetch=1,                         # seed -> SMEM
            grid=(M_pad // tm, V_pad // tv),
            in_specs=[
                pl.BlockSpec((tm, L), lambda i, k, seed: (i, 0)),       # label ids
                pl.BlockSpec((tv, D_pad), lambda i, k, seed: (k, 0)),   # emb table slab
            ],
            out_specs=pl.BlockSpec((tm, D_pad), lambda i, k, seed: (i, 0)),
            scratch_shapes=[pltpu.VMEM((tm, D_pad), jnp.float32)],
        ),
        compiler_params=pltpu.CompilerParams(
            dimension_semantics=("parallel", "arbitrary")),
    )(seed_arr, idx, emb)
    return out[:M, :D].reshape(B, S, D)


if __name__ == "__main__":
    # Module hyper-params (small, consistent with the forward pass)
    B, S, L = 2, 8, 3          # batch, seq_len, max labels per token
    V, D = 16, 32              # num_embeddings, embedding_dim
    dropout_p = 0.5            # module default (identity in eval mode)

    key = jax.random.PRNGKey(0)
    k_idx, k_emb = jax.random.split(key)

    # Deterministic padded multi-label indices; 0 is padding_idx.
    indices = jax.random.randint(k_idx, (B, S, L), 0, V, dtype=jnp.int32)

    # Deterministic embedding table; padding_idx=0 row zeroed (nn.Embedding init).
    emb = jax.random.normal(k_emb, (V, D), dtype=jnp.float32)
    emb = emb.at[0].set(0.0)

    # Eval semantics (training=False -> F.dropout is identity) so the check is exact.
    out = multilabel_embedding(indices, emb, dropout=dropout_p, training=False, seed=0)
    out = jax.block_until_ready(out)

    # References of the PyTorch forward (eval mode). The kernel feeds the MXU bf16
    # operands, so check exactly against the bf16-rounded table and loosely against
    # the full-f32 module output.
    emb_q = emb.astype(jnp.bfloat16).astype(jnp.float32)
    ref_q = emb_q[indices].sum(axis=2)                     # bit-level check of kernel math
    ref_f32 = emb[indices].sum(axis=2)                     # original f32 module semantics

    assert out.shape == (B, S, D)
    assert jnp.allclose(out, ref_q, atol=1e-5, rtol=1e-5), "mismatch vs bf16-exact reference"
    assert jnp.allclose(out, ref_f32, atol=3e-2, rtol=3e-2), "mismatch vs f32 reference"

    print("KERNEL_OK")
</pallas_src>

<mosaic_0001>
module attributes {stable_mosaic.version = 11 : i64} {
  func.func @_multilabel_emb_kernel(%arg0: i32, %arg1: i32, %arg2: memref<1xi32, #tpu.memory_space<smem>>, %arg3: memref<16x3xi32, #tpu.memory_space<vmem>>, %arg4: memref<16x128xbf16, #tpu.memory_space<vmem>>, %arg5: memref<16x128xf32, #tpu.memory_space<vmem>>, %arg6: memref<16x128xf32, #tpu.memory_space<vmem>>) attributes {dimension_semantics = [#tpu.dimension_semantics<parallel>, #tpu.dimension_semantics<arbitrary>], iteration_bounds = array<i64: 1, 1>, scalar_prefetch = 1 : i64, scratch_operands = 1 : i64, tpu.core_type = #tpu.core_type<tc>, window_params = [{transform_indices = @transform_0, window_bounds = array<i64: 16, 3>}, {transform_indices = @transform_1, window_bounds = array<i64: 16, 128>}, {transform_indices = @transform_2, window_bounds = array<i64: 16, 128>}]} {
    %c0_i32 = arith.constant 0 : i32
    %0 = arith.cmpi eq, %arg1, %c0_i32 : i32
    %1 = arith.extui %0 : i1 to i32
    %c0_i32_0 = arith.constant 0 : i32
    %2 = arith.cmpi ne, %1, %c0_i32_0 : i32
    scf.if %2 {
      %cst_14 = arith.constant 0.000000e+00 : f32
      %48 = vector.broadcast %cst_14 : f32 to vector<16x128xf32>
      %c0_15 = arith.constant 0 : index
      %c0_16 = arith.constant 0 : index
      %49 = vector.load %arg6[%c0_15, %c0_16] : memref<16x128xf32, #tpu.memory_space<vmem>>, vector<16x128xf32>
      tpu.vector_store %arg6[%c0_15, %c0_16], %48 {strides = array<i32>} : memref<16x128xf32, #tpu.memory_space<vmem>>, vector<16x128xf32>,
    } else {
    }
    %c0 = arith.constant 0 : index
    %c0_1 = arith.constant 0 : index
    %3 = vector.load %arg3[%c0, %c0_1] : memref<16x3xi32, #tpu.memory_space<vmem>>, vector<16x3xi32>
    %c16_i32 = arith.constant 16 : i32
    %4 = arith.muli %arg1, %c16_i32 : i32
    %5 = tpu.iota {dimensions = array<i32: 1>} : vector<16x16xi32>
    %6 = vector.broadcast %4 : i32 to vector<16x16xi32>
    %7 = arith.addi %6, %5 : vector<16x16xi32>
    %cst = arith.constant 0.000000e+00 : f32
    %8 = vector.broadcast %cst : f32 to vector<16x16xf32>
    %9 = vector.extract_strided_slice %3 {offsets = [0, 0], sizes = [16, 1], strides = [1, 1]} : vector<16x3xi32> to vector<16x1xi32>
    %10 = vector.broadcast %9 : vector<16x1xi32> to vector<16x16xi32>
    %11 = arith.cmpi eq, %7, %10 : vector<16x16xi32>
    %c0_i32_2 = arith.constant 0 : i32
    %12 = vector.broadcast %c0_i32_2 : i32 to vector<16x1xi32>
    %13 = arith.cmpi ne, %9, %12 : vector<16x1xi32>
    %14 = vector.broadcast %13 : vector<16x1xi1> to vector<16x16xi1>
    %15 = arith.andi %11, %14 : vector<16x16xi1>
    %16 = arith.extui %15 : vector<16x16xi1> to vector<16x16xi32>
    %17 = arith.sitofp %16 : vector<16x16xi32> to vector<16x16xf32>
    %18 = arith.addf %8, %17 : vector<16x16xf32>
    %19 = vector.extract_strided_slice %3 {offsets = [0, 1], sizes = [16, 1], strides = [1, 1]} : vector<16x3xi32> to vector<16x1xi32>
    %20 = vector.broadcast %19 : vector<16x1xi32> to vector<16x16xi32>
    %21 = arith.cmpi eq, %7, %20 : vector<16x16xi32>
    %c0_i32_3 = arith.constant 0 : i32
    %22 = vector.broadcast %c0_i32_3 : i32 to vector<16x1xi32>
    %23 = arith.cmpi ne, %19, %22 : vector<16x1xi32>
    %24 = vector.broadcast %23 : vector<16x1xi1> to vector<16x16xi1>
    %25 = arith.andi %21, %24 : vector<16x16xi1>
    %26 = arith.extui %25 : vector<16x16xi1> to vector<16x16xi32>
    %27 = arith.sitofp %26 : vector<16x16xi32> to vector<16x16xf32>
    %28 = arith.addf %18, %27 : vector<16x16xf32>
    %29 = vector.extract_strided_slice %3 {offsets = [0, 2], sizes = [16, 1], strides = [1, 1]} : vector<16x3xi32> to vector<16x1xi32>
    %30 = vector.broadcast %29 : vector<16x1xi32> to vector<16x16xi32>
    %31 = arith.cmpi eq, %7, %30 : vector<16x16xi32>
    %c0_i32_4 = arith.constant 0 : i32
    %32 = vector.broadcast %c0_i32_4 : i32 to vector<16x1xi32>
    %33 = arith.cmpi ne, %29, %32 : vector<16x1xi32>
    %34 = vector.broadcast %33 : vector<16x1xi1> to vector<16x16xi1>
    %35 = arith.andi %31, %34 : vector<16x16xi1>
    %36 = arith.extui %35 : vector<16x16xi1> to vector<16x16xi32>
    %37 = arith.sitofp %36 : vector<16x16xi32> to vector<16x16xf32>
    %38 = arith.addf %28, %37 : vector<16x16xf32>
    %39 = arith.truncf %38 : vector<16x16xf32> to vector<16x16xbf16>
    %c0_5 = arith.constant 0 : index
    %c0_6 = arith.constant 0 : index
    %40 = vector.load %arg6[%c0_5, %c0_6] : memref<16x128xf32, #tpu.memory_space<vmem>>, vector<16x128xf32>
    %c0_7 = arith.constant 0 : index
    %c0_8 = arith.constant 0 : index
    %41 = vector.load %arg4[%c0_7, %c0_8] : memref<16x128xbf16, #tpu.memory_space<vmem>>, vector<16x128xbf16>
    %cst_9 = arith.constant dense<0.000000e+00> : vector<16x128xf32>
    %42 = tpu.matmul %39, %41, %cst_9 {dimension_numbers = #tpu.dot_dimension_numbers<[1], [0], [0], [1], [0, 0, 1, 1], [], []>} : vector<16x16xbf16>, vector<16x128xbf16>, vector<16x128xf32> -> vector<16x128xf32>
    %43 = arith.addf %40, %42 : vector<16x128xf32>
    %c0_10 = arith.constant 0 : index
    %c0_11 = arith.constant 0 : index
    %44 = vector.load %arg6[%c0_10, %c0_11] : memref<16x128xf32, #tpu.memory_space<vmem>>, vector<16x128xf32>
    tpu.vector_store %arg6[%c0_10, %c0_11], %43 {strides = array<i32>} : memref<16x128xf32, #tpu.memory_space<vmem>>, vector<16x128xf32>,
    %c0_i32_12 = arith.constant 0 : i32
    %45 = arith.cmpi eq, %arg1, %c0_i32_12 : i32
    %46 = arith.extui %45 : i1 to i32
    %c0_i32_13 = arith.constant 0 : i32
    %47 = arith.cmpi ne, %46, %c0_i32_13 : i32
    scf.if %47 {
      %c0_14 = arith.constant 0 : index
      %c0_15 = arith.constant 0 : index
      %48 = vector.load %arg6[%c0_14, %c0_15] : memref<16x128xf32, #tpu.memory_space<vmem>>, vector<16x128xf32>
      %c0_16 = arith.constant 0 : index
      %c0_17 = arith.constant 0 : index
      %49 = vector.load %arg5[%c0_16, %c0_17] : memref<16x128xf32, #tpu.memory_space<vmem>>, vector<16x128xf32>
      tpu.vector_store %arg5[%c0_16, %c0_17], %48 {strides = array<i32>} : memref<16x128xf32, #tpu.memory_space<vmem>>, vector<16x128xf32>,
    } else {
    }
    return
  }
  func.func @transform_0(%arg0: i32, %arg1: i32, %arg2: memref<1xi32, #tpu.memory_space<smem>>) -> (i32, i32) {
    %c0_i32 = arith.constant 0 : i32
    %c0_i32_0 = arith.constant 0 : i32
    return %arg0, %c0_i32 : i32, i32
  }
  func.func @transform_1(%arg0: i32, %arg1: i32, %arg2: memref<1xi32, #tpu.memory_space<smem>>) -> (i32, i32) {
    %c0_i32 = arith.constant 0 : i32
    %c0_i32_0 = arith.constant 0 : i32
    return %arg1, %c0_i32 : i32, i32
  }
  func.func @transform_2(%arg0: i32, %arg1: i32, %arg2: memref<1xi32, #tpu.memory_space<smem>>) -> (i32, i32) {
    %c0_i32 = arith.constant 0 : i32
    %c0_i32_0 = arith.constant 0 : i32
    return %arg0, %c0_i32 : i32, i32
  }
}

</mosaic_0001>

<bundles_post_ra>
// kernel: tpu_custom_call.1
= control target key start
LH: loop header
LB: loop body
LE: loop exit
PB: predicated region body
PF: predicated region fallthrough
CT: control target
= control target key end

     0   :  { %v242_v2 = vmov 0   ;;  %s297_s0 = inlined_call_operand.<no memory space> [shape: s32[1], index: 0, kind: input, shape index: {}]   ;;  %s298_s1 = inlined_call_operand.vmem [shape: s32[16,3], index: 1, kind: input, shape index: {}]   ;;  %s299_s2 = inlined_call_operand.vmem [shape: bf16[16,128], index: 2, kind: input, shape index: {}]   ;;  %s300_s3 = inlined_call_operand.hbm [shape: f32[16,128], index: 3, kind: output, shape index: {}]  }
   0x1   :  { %v21_v0 = vld [vmem:[%s298_s1] sm:$0xff]  ;;  %v22_v1 = vld [vmem:[%s298_s1 + $0x8] sm:$0xff]  ;;  %211 = vset.pattern.permute.xlu0 %v242_v2  ;;  %212 = vset.pattern.permute.xlu1 %v242_v2 }
   0x2   :  { %vm36_vm0 = vcmp.ne.s32.totalorder %v21_v0, 0  ;;  %vm37_vm1 = vcmp.ne.s32.totalorder %v22_v1, 0  ;;  %29 = vperm.xlu0 %211, %v21_v0  }
   0x3   :  { %v38_v3 = vsel %vm36_vm0, 1, %v242_v2 }
   0x4   :  { %9 = vsyncpa [#allocation6], 0  ;;  %41 = vperm.xlu1 %212, %v38_v3   ;;  %v243_v4 = vmov 0.0   ;;  %v39_v5 = vsel %vm37_vm1, 1, %v242_v2  ;;  %v244_v6 = vmov 1   ;;  %v245_v7 = vmov 2  }
   0x5   :  { %197 = vmatprep.subr.bf16.mxu0 %v243_v4  ;;  %v217_v8 = vld [vmem:[%s299_s2] sm:$0xff]   ;;  %vm246_vm2 = vmmov 0   ;;  %v24_v13 = vlaneseq  ;;  %s247_s2 = smov [#allocation5]  }
   0x6   :  { %32 = vperm.xlu0 %211, %v22_v1   ;;  %198 = vmatpush3.bf16.msra.mxu0 %v217_v8  ;;  %s176_s16 = sshll.u32 %s247_s2, 4  ;;  %s177_s16 = int_to_ptr.vmem [resolvable:$true] %s176_s16 }
   0x7   :  { %199 = vmatprep.mubr.msk.bf16.mxu0 %vm246_vm2, %v243_v4  ;;  %v25_v16 = vand.u32 127, %v24_v13  ;;  %s218_s17 = scalar_lea.vmem %s177_s16, 256  ;;  %p223_p1 = scmp.lt.s32.totalorder %s177_s16, %s177_s16 }
   0x8   :  { %44 = vperm.xlu1 %212, %v39_v5   ;;  %p219_p0 = scmp.ne.s32.totalorder %s177_s16, %s218_s17  ;;  %p224_p2 = scmp.lt.s32.totalorder %s218_s17, %s218_s17 }
   0xa   :  { %213 = vset.pattern.permute.xlu0 %v244_v6  ;;  %p225_p3 = por %p224_p2, %p223_p1 }
   0xb   :  { %57 = vperm.xlu0 %213, %v21_v0  }
   0xc   :  { %214 = vset.pattern.permute.xlu1 %v244_v6  ;;  %p226_p4 = pnand %p225_p3, %p219_p0 }
   0xd   :  { %60 = vperm.xlu1 %214, %v22_v1  }
   0xf   :  { %68 = vperm.xlu0 %213, %v39_v5  }
  0x11   :  { %65 = vperm.xlu1 %214, %v38_v3  }
  0x13   :  { %216 = vset.pattern.permute.xlu0 %v245_v7 }
  0x14   :  { %84 = vperm.xlu0 %216, %v22_v1  }
  0x15   :  { %215 = vset.pattern.permute.xlu1 %v245_v7 }
  0x16   :  { %81 = vperm.xlu1 %215, %v21_v0  }
  0x1a   :  { %89 = vperm.xlu1 %215, %v38_v3  }
  0x1e   :  { %92 = vperm.xlu1 %215, %v39_v5  }
  0x81   :  { %v30_v9 = vpop.permute.xlu0 %29 }
  0x82   :  { %vm34_vm3 = vcmp.eq.s32.totalorder %v25_v16, %v30_v9 }
  0x83   :  { %v42_v10 = vpop.permute.xlu1 %41 }
  0x84   :  { %vm46_vm4 = vcmp.eq.s32.totalorder %v42_v10, 1 }
  0x85   :  { %v33_v11 = vpop.permute.xlu0 %32  ;;  %vm279_vm8 = vmand %vm34_vm3, %vm46_vm4 }
  0x86   :  { %vm35_vm9 = vcmp.eq.s32.totalorder %v25_v16, %v33_v11  ;;  %v187_v26 = vsel %vm279_vm8, 1.0, %v243_v4 }
  0x87   :  { %v45_v12 = vpop.permute.xlu1 %44 }
  0x88   :  { %vm47_vm10 = vcmp.eq.s32.totalorder %v45_v12, 1 }
  0x89   :  { %vm49_vm14 = vmand %vm35_vm9, %vm47_vm10 }
  0x8a   :  { %v58_v14 = vpop.permute.xlu0 %57  ;;  %v188_v27 = vsel %vm49_vm14, 1.0, %v243_v4 }
  0x8b   :  { %vm62_vm6 = vcmp.eq.s32.totalorder %v25_v16, %v58_v14 }
  0x8c   :  { %v61_v15 = vpop.permute.xlu1 %60 }
  0x8d   :  { %vm63_vm11 = vcmp.eq.s32.totalorder %v25_v16, %v61_v15 }
  0x8e   :  { %v69_v18 = vpop.permute.xlu0 %68 }
  0x8f   :  { %vm71_vm5 = vcmp.eq.s32.totalorder %v69_v18, 1 }
  0x90   :  { %v66_v17 = vpop.permute.xlu1 %65  ;;  %vm73_vm12 = vmand %vm63_vm11, %vm71_vm5  ;;  %vm115_vm5 = vcmask 130048  }
  0x91   :  { %vm70_vm7 = vcmp.eq.s32.totalorder %v66_v17, 1  ;;  %v190_v23 = vsel %vm73_vm12, 1.0, %v243_v4 }
  0x92   :  { %vm72_vm13 = vmand %vm62_vm6, %vm70_vm7  ;;  %v79_v29 = vadd.f32 %v190_v23, %v188_v27 }
  0x93   :  { %v85_v22 = vpop.permute.xlu0 %84  ;;  %v189_v24 = vsel %vm72_vm13, 1.0, %v243_v4 }
  0x94   :  { %vm87_vm2 = vcmp.eq.s32.totalorder %v25_v16, %v85_v22  ;;  %v78_v30 = vadd.f32 %v189_v24, %v187_v26 }
  0x95   :  { %v82_v19 = vpop.permute.xlu1 %81 }
  0x96   :  { %vm86_vm15 = vcmp.eq.s32.totalorder %v25_v16, %v82_v19 }
  0x99   :  { %v90_v21 = vpop.permute.xlu1 %89 }
  0x9a   :  { %vm94_vm0 = vcmp.eq.s32.totalorder %v90_v21, 1 }
  0x9b   :  { %vm96_vm1 = vmand %vm86_vm15, %vm94_vm0 }
  0x9c   :  { %v191_v28 = vsel %vm96_vm1, 1.0, %v243_v4 }
  0x9d   :  { %v93_v25 = vpop.permute.xlu1 %92  ;;  %v102_v32 = vadd.f32 %v191_v28, %v78_v30 }
  0x9e   :  { %vm95_vm3 = vcmp.eq.s32.totalorder %v93_v25, 1 }
  0x9f   :  { %vm97_vm4 = vmand %vm87_vm2, %vm95_vm3 }
  0xa0   :  { %v192_v31 = vsel %vm97_vm4, 1.0, %v243_v4 }
  0xa1   :  { %v103_v33 = vadd.f32 %v192_v31, %v79_v29 }
  0xa3   :  { %v104_v34 = vpack.c.bf16 %v103_v33, %v102_v32 }
  0xa5   :  { %200 = vmatmul.mubr.msk.bf16.vlgmr.msra.gmra.mrb[0].mxu0 %vm115_vm5, %v104_v34 }
 0x178   :  { %v153_v35 = vpop.f32.mrb[0].mxu0 }
 0x179   :  { %169 = vst [vmem:[#allocation5] sm:$0xff] %v153_v35  ;;  %v201_v36 = vpop.f32.mrb[1].mxu0 }
 0x17a   :  { %v156_v37 = vpop.f32.mrb[2].mxu0 }
 0x17b   :  { %170 = vst [vmem:[#allocation5 + $0x8] sm:$0xff] %v156_v37  ;;  %v202_v38 = vpop.f32.mrb[3].mxu0 }
 0x17c   :  { %229 = shalt.err (!%p226_p4)
}
 0x17d   :  { %s230_s20 = scalar_lea.hbm %s300_s3, 256 }
 0x17e   :  { %p231_p5 = scmp.ne.s32.totalorder %s300_s3, %s230_s20  ;;  %p234_p6 = scmp.lt.u32.totalorder %s230_s20, %s300_s3 }
 0x180   :  { %p236_p7 = pnand %p234_p6, %p231_p5 }
 0x182   :  { %239 = shalt.err (!%p236_p7)
}
 0x183   :  { %s248_s25 = smov 128   ;;  %s249_s26 = smov 8  }
 0x184   :  { %182 = dma.vmem_to_hbm [thread:$0]  %s177_s16, 256, %s300_s3, [#allocation6], %s248_s25, %s248_s25, %s249_s26  }
 0x185   :  { %240 = dma.done.wait [#allocation6], 256  }
 0x186   :  { %241 = vsyncadd [#allocation6], 4294967040 }
 0x187   :  { %186 = vsyncpa [#allocation6], 1 }

</bundles_post_ra>
